<compile_context>
chip_gen: v7x
topology: tpu7x:2x2x1
jax: 0.10.0
libtpu: 0.0.40
codegen_flags: <defaults>
</compile_context>

<pallas_src>
import jax
import jax.numpy as jnp
import numpy as np
from jax import lax
from jax.experimental import pallas as pl
from jax.experimental.pallas import tpu as pltpu


def _round_up(x, m):
    return ((x + m - 1) // m) * m


def _cdiv(a, b):
    return -(-a // b)


def _chk_ids_to_indices(ids):
    """[0,0,0,1,2,2] -> [0,1,2,0,0,1] (relative index within each chunk run)."""
    ids = ids.astype(jnp.int32)
    L = ids.shape[0]
    pos = jnp.arange(L, dtype=jnp.int32)
    if L == 1:
        return jnp.zeros((1,), jnp.int32)
    is_start = jnp.concatenate([jnp.ones((1,), jnp.bool_), ids[1:] != ids[:-1]])
    run_start = lax.cummax(jnp.where(is_start, pos, 0), axis=0)
    return pos - run_start


def _chunk_embed_kernel(reg_ref, tok_ref, table_ref, out_ref):
    # reg_ref, tok_ref : (1, block_rows) int32   (lane-dense index blocks)
    # table_ref        : (v_pad, n_embd) f32     (resident: [chunk ; token] table)
    # out_ref          : (block_rows, n_embd) f32
    v_pad = table_ref.shape[0]
    block_rows = out_ref.shape[0]
    row_ids = lax.broadcasted_iota(jnp.int32, (v_pad, block_rows), 0)
    # Transposed two-hot selector: column r has ones at reg[r] and tok[r]
    # (token rows are offset past the chunk rows, so they never collide).
    sel = (row_ids == reg_ref[...]) | (row_ids == tok_ref[...])
    onehot_t = sel.astype(jnp.float32)
    # out = onehot_t.T @ table  ==  chunk_embed[reg] + token_type_embed[tok]
    out_ref[...] = lax.dot_general(
        onehot_t,
        table_ref[...],
        dimension_numbers=(((0,), (0,)), ((), ())),
        preferred_element_type=jnp.float32,
        precision=lax.Precision.HIGHEST,  # exact f32 gather-sum
    )


def _pick_block_rows(n_rows, n_embd, v_pad):
    """Largest row tile whose double-buffered output + temps fit the VMEM budget."""
    try:
        vmem_bytes = int(pltpu.get_tpu_info().vmem_capacity_bytes)
    except Exception:  # conservative fallback: v7x per-TC VMEM
        vmem_bytes = 64 << 20
    # Per-row VMEM cost: 2x f32 output buffers + one-hot / bool temporaries
    # (v_pad lanes) + double-buffered int32 index lanes + slack.
    per_row = 2 * n_embd * 4 + 3 * v_pad * 4 + 32
    budget = min(vmem_bytes // 4, 16 << 20)
    cap = max(budget // per_row, 8)
    cap = min(cap, 8192)
    gran = 128 if (n_rows >= 128 and cap >= 128) else 8
    cap = max((cap // gran) * gran, gran)
    num_blocks = _cdiv(n_rows, cap)
    # Keep >= 2 parallel grid steps when there is enough work (v7x has 2 TCs).
    if num_blocks == 1 and n_rows >= 2 * 128:
        num_blocks = 2
    rows = _round_up(_cdiv(n_rows, num_blocks), gran)
    return int(rows)


def _chunk_embedding_impl(chk_ids, tk_ids, chunk_embed_weight, token_type_embed_weight):
    """ChunkEmbedding.forward: chunk_embed(rel_idx(chk_ids)) + token_type_embed(tk_ids)."""
    B, L = tk_ids.shape
    max_chunk_size, n_embd = chunk_embed_weight.shape
    num_token_types = token_type_embed_weight.shape[0]

    chk_ids = chk_ids.astype(jnp.int32)
    tk_ids = tk_ids.astype(jnp.int32)

    # chk_ids -> relative indices within each chunk run (index prep / glue).
    reg_indices = jax.vmap(_chk_ids_to_indices)(chk_ids)          # (Bc, L)
    if reg_indices.shape[0] == 1 and B > 1:
        reg_indices = jnp.broadcast_to(reg_indices, (B, L))

    # Fuse the two lookups: one combined table, token ids offset past it.
    v_total = max_chunk_size + num_token_types
    v_pad = _round_up(v_total, 8)
    table = jnp.zeros((v_pad, n_embd), jnp.float32)
    table = table.at[:max_chunk_size].set(chunk_embed_weight.astype(jnp.float32))
    table = table.at[max_chunk_size:v_total].set(
        token_type_embed_weight.astype(jnp.float32))

    reg_flat = reg_indices.reshape(-1)
    tok_flat = (tk_ids + max_chunk_size).reshape(-1)
    n_rows = B * L

    block_rows = _pick_block_rows(n_rows, n_embd, v_pad)
    n_pad = _round_up(n_rows, block_rows)
    num_blocks = n_pad // block_rows
    pad = n_pad - n_rows
    # Padding rows gather valid table rows; the padded output is sliced off below.
    reg_blk = jnp.pad(reg_flat, (0, pad)).reshape(num_blocks, block_rows)
    tok_blk = jnp.pad(tok_flat, (0, pad),
                      constant_values=max_chunk_size).reshape(num_blocks, block_rows)

    out = pl.pallas_call(
        _chunk_embed_kernel,
        out_shape=jax.ShapeDtypeStruct((n_pad, n_embd), jnp.float32),
        grid_spec=pltpu.PrefetchScalarGridSpec(
            num_scalar_prefetch=0,
            grid=(num_blocks,),
            in_specs=[
                pl.BlockSpec((1, block_rows), lambda i: (i, 0)),     # reg indices
                pl.BlockSpec((1, block_rows), lambda i: (i, 0)),     # token indices
                pl.BlockSpec((v_pad, n_embd), lambda i: (0, 0)),     # resident table
            ],
            out_specs=pl.BlockSpec((block_rows, n_embd), lambda i: (i, 0)),
        ),
        compiler_params=pltpu.CompilerParams(
            dimension_semantics=("parallel",),
            vmem_limit_bytes=32 << 20,
        ),
    )(reg_blk, tok_blk, table)

    return out[:n_rows].reshape(B, L, n_embd)


chunk_embedding = jax.jit(_chunk_embedding_impl)


if __name__ == "__main__":
    B, L, n_embd = 2, 8, 128
    max_chunk_size, num_token_types = 8, 4

    key = jax.random.PRNGKey(0)
    k1, k2, k3 = jax.random.split(key, 3)
    chunk_w = jax.random.normal(k1, (max_chunk_size, n_embd), dtype=jnp.float32)
    token_w = jax.random.normal(k2, (num_token_types, n_embd), dtype=jnp.float32)
    tk_ids = jax.random.randint(k3, (B, L), 0, num_token_types, dtype=jnp.int32)
    # Shared chunk ids (batch dim 1 -> broadcast across B), grouped runs as in
    # the module docstring: [0,0,0,1,2,2,2,3] -> [0,1,2,0,0,1,2,0]
    chk_ids = jnp.array([[0, 0, 0, 1, 2, 2, 2, 3]], dtype=jnp.int32)

    out = chunk_embedding(chk_ids, tk_ids, chunk_w, token_w)
    out = jax.block_until_ready(out)

    # ---- reference: numpy transcription of the torch forward ----
    def ref_rel_idx(ids):
        ids = np.asarray(ids)
        rel = np.zeros_like(ids)
        start = 0
        for i in range(len(ids)):
            if i > 0 and ids[i] != ids[i - 1]:
                start = i
            rel[i] = i - start
        return rel

    chk_np = np.asarray(chk_ids)
    reg_np = np.stack([ref_rel_idx(row) for row in chk_np])
    if reg_np.shape[0] == 1:
        reg_np = np.repeat(reg_np, B, axis=0)
    ref = np.asarray(chunk_w)[reg_np] + np.asarray(token_w)[np.asarray(tk_ids)]

    assert out.shape == (B, L, n_embd)
    np.testing.assert_allclose(np.asarray(out), ref, rtol=1e-5, atol=1e-5)
    print("KERNEL_OK")
</pallas_src>

<mosaic_0001>
module attributes {stable_mosaic.version = 11 : i64} {
  func.func @_chunk_embed_kernel(%arg0: i32, %arg1: memref<1x16xi32, #tpu.memory_space<vmem>>, %arg2: memref<1x16xi32, #tpu.memory_space<vmem>>, %arg3: memref<16x128xf32, #tpu.memory_space<vmem>>, %arg4: memref<16x128xf32, #tpu.memory_space<vmem>>) attributes {dimension_semantics = [#tpu.dimension_semantics<parallel>], iteration_bounds = array<i64: 1>, scalar_prefetch = 0 : i64, scratch_operands = 0 : i64, tpu.core_type = #tpu.core_type<tc>, window_params = [{transform_indices = @transform_0, window_bounds = array<i64: 1, 16>}, {transform_indices = @transform_1, window_bounds = array<i64: 1, 16>}, {pipeline_mode = #tpu.pipeline_mode<synchronous>, transform_indices = @transform_2, window_bounds = array<i64: 16, 128>}, {transform_indices = @transform_3, window_bounds = array<i64: 16, 128>}]} {
    %0 = tpu.iota {dimensions = array<i32: 0>} : vector<16x16xi32>
    %c0 = arith.constant 0 : index
    %c0_0 = arith.constant 0 : index
    %1 = vector.load %arg1[%c0, %c0_0] : memref<1x16xi32, #tpu.memory_space<vmem>>, vector<1x16xi32>
    %2 = vector.broadcast %1 : vector<1x16xi32> to vector<16x16xi32>
    %3 = arith.cmpi eq, %0, %2 : vector<16x16xi32>
    %c0_1 = arith.constant 0 : index
    %c0_2 = arith.constant 0 : index
    %4 = vector.load %arg2[%c0_1, %c0_2] : memref<1x16xi32, #tpu.memory_space<vmem>>, vector<1x16xi32>
    %5 = vector.broadcast %4 : vector<1x16xi32> to vector<16x16xi32>
    %6 = arith.cmpi eq, %0, %5 : vector<16x16xi32>
    %7 = arith.ori %3, %6 : vector<16x16xi1>
    %8 = arith.extui %7 : vector<16x16xi1> to vector<16x16xi32>
    %9 = arith.sitofp %8 : vector<16x16xi32> to vector<16x16xf32>
    %c0_3 = arith.constant 0 : index
    %c0_4 = arith.constant 0 : index
    %10 = vector.load %arg3[%c0_3, %c0_4] : memref<16x128xf32, #tpu.memory_space<vmem>>, vector<16x128xf32>
    %cst = arith.constant dense<0.000000e+00> : vector<16x128xf32>
    %11 = tpu.matmul %9, %10, %cst {dimension_numbers = #tpu.dot_dimension_numbers<[0], [0], [1], [1], [0, 1, 1, 1], [], []>, precision = #tpu.contract_precision<fp32>} : vector<16x16xf32>, vector<16x128xf32>, vector<16x128xf32> -> vector<16x128xf32>
    %c0_5 = arith.constant 0 : index
    %c0_6 = arith.constant 0 : index
    %12 = vector.load %arg4[%c0_5, %c0_6] : memref<16x128xf32, #tpu.memory_space<vmem>>, vector<16x128xf32>
    tpu.vector_store %arg4[%c0_5, %c0_6], %11 {strides = array<i32>} : memref<16x128xf32, #tpu.memory_space<vmem>>, vector<16x128xf32>,
    return
  }
  func.func @transform_0(%arg0: i32) -> (i32, i32) {
    %c0_i32 = arith.constant 0 : i32
    %c0_i32_0 = arith.constant 0 : i32
    return %arg0, %c0_i32 : i32, i32
  }
  func.func @transform_1(%arg0: i32) -> (i32, i32) {
    %c0_i32 = arith.constant 0 : i32
    %c0_i32_0 = arith.constant 0 : i32
    return %arg0, %c0_i32 : i32, i32
  }
  func.func @transform_2(%arg0: i32) -> (i32, i32) {
    %c0_i32 = arith.constant 0 : i32
    %c0_i32_0 = arith.constant 0 : i32
    %c0_i32_1 = arith.constant 0 : i32
    return %c0_i32, %c0_i32_0 : i32, i32
  }
  func.func @transform_3(%arg0: i32) -> (i32, i32) {
    %c0_i32 = arith.constant 0 : i32
    %c0_i32_0 = arith.constant 0 : i32
    return %arg0, %c0_i32 : i32, i32
  }
}

</mosaic_0001>

<bundles_post_ra>
// kernel: _chunk_embedding_impl.1
= control target key start
LH: loop header
LB: loop body
LE: loop exit
PB: predicated region body
PF: predicated region fallthrough
CT: control target
= control target key end

     0   :  { %v15_v0 = vlaneseq  ;;  %s779_s0 = inlined_call_operand.vmem [shape: s32[1,16], index: 0, kind: input, shape index: {}]   ;;  %s780_s1 = inlined_call_operand.vmem [shape: s32[1,16], index: 1, kind: input, shape index: {}]   ;;  %s781_s2 = inlined_call_operand.vmem [shape: f32[16,128], index: 2, kind: input, shape index: {}]   ;;  %s782_s3 = inlined_call_operand.hbm [shape: f32[16,128], index: 3, kind: output, shape index: {}]  }
   0x1   :  { %v599_v1 = vld [vmem:[%s779_s0] ss:$0 sm:$0xff] }
   0x2   :  { %v600_v2 = vld [vmem:[%s780_s1] ss:$0 sm:$0xff] }
   0x3   :  { %8 = vsyncpa [#allocation3], 0  ;;  %v16_v3 = vshrl.u32 %v15_v0, 7  ;;  %v731_v5 = vmov 0.0   ;;  %v38_v8 = vld [vmem:[%s781_s2] sm:$0xff]  ;;  %v39_v9 = vld [vmem:[%s781_s2 + $0x8] sm:$0xff] }
   0x4   :  { %v80_v10 = vand.u32 4294901760, %v38_v8  ;;  %v83_v11 = vand.u32 4294901760, %v39_v9  ;;  %vm72_vm6 = vcmask 130048   ;;  %s732_s1 = smov [#allocation2]  }
   0x5   :  { %vm23_vm0 = vcmp.eq.s32.totalorder %v16_v3, %v599_v1  ;;  %vm30_vm1 = vcmp.eq.s32.totalorder %v16_v3, %v600_v2  ;;  %v17_v4 = vadd.s32 8, %v16_v3  ;;  %s588_s2 = sshll.u32 %s732_s1, 4  ;;  %s589_s2 = int_to_ptr.vmem [resolvable:$true] %s588_s2 }
   0x6   :  { %vm32_vm2 = vmor %vm23_vm0, %vm30_vm1  ;;  %v669_v12 = vpack.c.bf16 %v83_v11, %v80_v10  ;;  %v168_v13 = vsub.f32 %v38_v8, %v80_v10  ;;  %v175_v14 = vsub.f32 %v39_v9, %v83_v11  ;;  %s707_s19 = scalar_lea.vmem %s589_s2, 256  ;;  %p712_p1 = scmp.lt.s32.totalorder %s589_s2, %s589_s2 }
   0x7   :  { %v601_v6 = vsel %vm32_vm2, 1.0, %v731_v5  ;;  %vm24_vm3 = vcmp.eq.s32.totalorder %v17_v4, %v599_v1  ;;  %vm31_vm4 = vcmp.eq.s32.totalorder %v17_v4, %v600_v2  ;;  %p708_p0 = scmp.ne.s32.totalorder %s589_s2, %s707_s19  ;;  %p713_p2 = scmp.lt.s32.totalorder %s707_s19, %s707_s19 }
   0x8   :  { %40 = vxpose.xlu0.b32.start [1/2] (short) (narrow) %v601_v6, 16  ;;  %vm33_vm5 = vmor %vm24_vm3, %vm31_vm4  ;;  %682 = vmatprep.subr.bf16.mxu0 %v669_v12  ;;  %v169_v15 = vand.u32 4294901760, %v168_v13  ;;  %v176_v16 = vand.u32 4294901760, %v175_v14  ;;  %v677_v23 = vpack.c.bf16 %v175_v14, %v168_v13 }
   0x9   :  { %v602_v7 = vsel %vm33_vm5, 1.0, %v731_v5  ;;  %670 = vmatprep.subr.bf16.mxu1 %v669_v12  ;;  %684 = vmatpush3.bf16.msra.mxu0 %v669_v12  ;;  %p714_p3 = por %p713_p2, %p712_p1 }
   0xa   :  { %672 = vmatpush3.bf16.msra.mxu1 %v669_v12  ;;  %v170_v17 = vsub.f32 %v168_v13, %v169_v15  ;;  %v177_v18 = vsub.f32 %v175_v14, %v176_v16  ;;  %v685_v19 = vpack.c.bf16 %v176_v16, %v169_v15 }
   0xb   :  { %p715_p4 = pnand %p714_p3, %p708_p0 }
   0xc   :  { %41 = vxpose.xlu0.b32.end [2/2] (short) (narrow) %v602_v7, 16  ;;  %v171_v20 = vand.u32 4294901760, %v170_v17  ;;  %v178_v21 = vand.u32 4294901760, %v177_v18  ;;  %686 = vmatprep.subr.bf16.mxu0 %v685_v19 }
   0xe   :  { %v673_v22 = vpack.c.bf16 %v178_v21, %v171_v20 }
  0x10   :  { %674 = vmatprep.subr.bf16.mxu1 %v673_v22 }
  0x88   :  { %v56_v24 = vpop.trf.xlu0 }
  0x89   :  { %v74_v25 = vsel %vm72_vm6, %v56_v24, 0 }
  0x8a   :  { %v146_v26 = vand.u32 4294901760, %v74_v25 }
  0x8c   :  { %v147_v27 = vsub.f32 %v74_v25, %v146_v26  ;;  %v57_v28 = vpop.trf.xlu0 }
  0x8d   :  { %v77_v29 = vsel %vm72_vm6, %v57_v28, 0 }
  0x8e   :  { %v156_v30 = vand.u32 4294901760, %v77_v29  ;;  %v148_v31 = vand.u32 4294901760, %v147_v27 }
  0x90   :  { %v157_v32 = vsub.f32 %v77_v29, %v156_v30  ;;  %652 = vmatprep.mubr.f32.mxu0 %v148_v31  ;;  %v149_v33 = vsub.f32 %v147_v27, %v148_v31 }
  0x92   :  { %v150_v34 = vand.u32 4294901760, %v149_v33  ;;  %v158_v35 = vand.u32 4294901760, %v157_v32 }
  0x94   :  { %631 = vmatprep.mubr.f32.mxu1 %v150_v34  ;;  %653 = vmatmul.mubr.f32.vlgmr.msra.gmra.mrb[0].mxu0 %v158_v35  ;;  %v159_v36 = vsub.f32 %v157_v32, %v158_v35 }
  0x95   :  { %659 = vmatprep.mubr.f32.mxu0 %v146_v26  ;;  %688 = vmatpush3.bf16.msra.mxu0 %v685_v19 }
  0x96   :  { %v160_v37 = vand.u32 4294901760, %v159_v36  ;;  %690 = vmatprep.subr.bf16.mxu0 %v669_v12 }
  0x98   :  { %632 = vmatmul.mubr.f32.vlgmr.msra.gmra.mrb[0].mxu1 %v160_v37 }
  0x99   :  { %676 = vmatpush3.bf16.msra.mxu1 %v673_v22  ;;  %638 = vmatprep.mubr.f32.mxu1 %v146_v26 }
  0x9a   :  { %678 = vmatprep.subr.bf16.mxu1 %v677_v23 }
  0x9c   :  { %660 = vmatmul.mubr.f32.vlgmr.msra.gmra.mrb[0].mxu0 %v156_v30 }
  0x9d   :  { %666 = vmatprep.mubr.f32.mxu0 %v146_v26  ;;  %692 = vmatpush3.bf16.msra.mxu0 %v669_v12 }
  0xa0   :  { %639 = vmatmul.mubr.f32.vlgmr.msra.gmra.mrb[0].mxu1 %v156_v30 }
  0xa1   :  { %680 = vmatpush3.bf16.msra.mxu1 %v677_v23  ;;  %645 = vmatprep.mubr.f32.mxu1 %v147_v27 }
  0xa4   :  { %667 = vmatmul.mubr.f32.vlgmr.msra.gmra.mrb[0].mxu0 %v156_v30 }
  0xa8   :  { %646 = vmatmul.mubr.f32.vlgmr.msra.gmra.mrb[0].mxu1 %v157_v32 }
 0x177   :  { %v668_v38 = vpop.f32.mrb[0].mxu0 }
 0x178   :  { %v571_v39 = vpop.f32.mrb[1].mxu0 }
 0x17b   :  { %v647_v40 = vpop.f32.mrb[0].mxu1 }
 0x17c   :  { %v693_v41 = vadd.f32 %v668_v38, %v647_v40  ;;  %v325_v42 = vpop.f32.mrb[1].mxu1 }
 0x17d   :  { %v694_v43 = vadd.f32 %v571_v39, %v325_v42 }
 0x17e   :  { %582 = vst [vmem:[#allocation2 + $0x8] sm:$0xff] %v693_v41 }
 0x17f   :  { %581 = vst [vmem:[#allocation2] sm:$0xff] %v694_v43 }
 0x180   :  { %718 = shalt.err (!%p715_p4)
}
 0x181   :  { %s719_s22 = scalar_lea.hbm %s782_s3, 256 }
 0x182   :  { %p720_p5 = scmp.ne.s32.totalorder %s782_s3, %s719_s22  ;;  %p723_p6 = scmp.lt.u32.totalorder %s719_s22, %s782_s3 }
 0x184   :  { %p725_p7 = pnand %p723_p6, %p720_p5 }
 0x186   :  { %728 = shalt.err (!%p725_p7)
}
 0x187   :  { %s733_s27 = smov 128   ;;  %s734_s28 = smov 8  }
 0x188   :  { %594 = dma.vmem_to_hbm [thread:$0]  %s589_s2, 256, %s782_s3, [#allocation3], %s733_s27, %s733_s27, %s734_s28  }
 0x189   :  { %729 = dma.done.wait [#allocation3], 256  }
 0x18a   :  { %730 = vsyncadd [#allocation3], 4294967040 }
 0x18b   :  { %598 = vsyncpa [#allocation3], 1 }

</bundles_post_ra>
